<compile_context>
chip_gen: v6e
topology: v6e:2x2x1
jax: 0.10.0
libtpu: 0.0.40
codegen_flags: <defaults>
</compile_context>

<pallas_src>
import math

import jax
import jax.numpy as jnp
from jax.experimental import pallas as pl
from jax.experimental.pallas import tpu as pltpu


def _mhsa_kernel(nh, dk, dv, dim_k, dim_v):
    """Returns a Pallas kernel closed over the static head configuration."""
    k_off = dim_k          # start of K columns in the fused QKV slab
    v_off = 2 * dim_k      # start of V columns in the fused QKV slab

    def kernel(x_ref, w_ref, perm_ref, out_ref):
        # Fused QKV projection: one MXU matmul, f32 accumulation.
        # norm_fact is already folded into the Q columns of w_ref.
        qkv = jnp.dot(x_ref[...], w_ref[...],
                      preferred_element_type=jnp.float32)       # (TB, 2*dim_k + dim_v)

        # nh is small; Python unroll keeps the code simple.
        # TODO(synk): for large nh switch to lax.fori_loop(..., unroll=True) to bound
        # vreg live ranges.
        head_outs = []
        for h1 in range(nh):
            qh = qkv[:, h1 * dk:(h1 + 1) * dk]                  # (TB, dk), pre-scaled

            # Lane-resident (TB, nh) logits tile for query head h1.
            logit_cols = [
                jnp.sum(qh * qkv[:, k_off + h2 * dk: k_off + (h2 + 1) * dk],
                        axis=-1, keepdims=True)                 # XLU reduce -> (TB, 1)
                for h2 in range(nh)
            ]
            logits = jnp.concatenate(logit_cols, axis=-1)       # (TB, nh)

            # Numerically-stable softmax, all lane-dense f32 math.
            m = jnp.max(logits, axis=-1, keepdims=True)
            e = jnp.exp(logits - m)                             # EUP
            denom = jnp.sum(e, axis=-1, keepdims=True)          # in [1, nh]
            inv = pl.reciprocal(denom, approx=True)             # EUP slot
            inv = inv * (2.0 - denom * inv)                     # 1 Newton step -> ~f32 exact
            p = e * inv                                         # (TB, nh)

            # att_h1 = sum_h2 p[:, h2] * v_h2   -> (TB, dv)
            acc = p[:, 0:1] * qkv[:, v_off:v_off + dv]
            for h2 in range(1, nh):
                acc = acc + p[:, h2:h2 + 1] * qkv[:, v_off + h2 * dv: v_off + (h2 + 1) * dv]
            head_outs.append(acc)

        # Head-major slab, then fold PyTorch's transpose(1,2).reshape interleave into a
        # permutation matmul so the single output store is lane-dense AND final.
        att_hm = jnp.concatenate(head_outs, axis=-1)            # (TB, dim_v), head-major
        out = jnp.dot(att_hm, perm_ref[...], preferred_element_type=jnp.float32)
        out_ref[...] = out.astype(out_ref.dtype)                # one dense store

    return kernel


def multi_head_self_attention(x, wq, wk, wv, num_heads,
                              compute_dtype=jnp.float32, block_batch=512):
    """x: (B, dim_in); wq/wk: (dim_k, dim_in); wv: (dim_v, dim_in) (PyTorch layout)."""
    batch, dim_in = x.shape
    dim_k = wq.shape[0]
    dim_v = wv.shape[0]
    nh = num_heads
    dk = dim_k // nh
    dv = dim_v // nh
    norm_fact = 1.0 / math.sqrt(dk)
    d_qkv = 2 * dim_k + dim_v

    # Fused QKV weight slab (dim_in, 2*dim_k + dim_v); norm folded into Q columns.
    w_fused = jnp.concatenate(
        [wq.T.astype(jnp.float32) * norm_fact,
         wk.T.astype(jnp.float32),
         wv.T.astype(jnp.float32)], axis=1)

    # Permutation matrix: head-major (h1*dv + d) -> dv-major/head-minor (d*nh + h1),
    # i.e. exactly PyTorch's att.transpose(1, 2).reshape(batch, dim_v).
    src = jnp.arange(dim_v)
    dst = (src % dv) * nh + (src // dv)
    perm = jnp.zeros((dim_v, dim_v), jnp.float32).at[src, dst].set(1.0)

    # bf16 projection inputs (v6e/v7x MXU, half the DMA bytes); softmax stays f32.
    x_c = x.astype(compute_dtype)
    w_c = w_fused.astype(compute_dtype)

    # Batch tile: whole batch when it is small; otherwise a sublane-aligned tile.
    if batch <= block_batch:
        tb = batch
    else:
        tb = max(8, (block_batch // 8) * 8)
    grid = (pl.cdiv(batch, tb),)

    kernel = _mhsa_kernel(nh, dk, dv, dim_k, dim_v)

    return pl.pallas_call(
        kernel,
        out_shape=jax.ShapeDtypeStruct((batch, dim_v), jnp.float32),
        grid_spec=pltpu.PrefetchScalarGridSpec(
            num_scalar_prefetch=0,
            grid=grid,
            in_specs=[
                pl.BlockSpec((tb, dim_in), lambda i: (i, 0)),       # x batch tile
                pl.BlockSpec((dim_in, d_qkv), lambda i: (0, 0)),    # fused QKV weights (grid-invariant)
                pl.BlockSpec((dim_v, dim_v), lambda i: (0, 0)),     # layout permutation (grid-invariant)
            ],
            out_specs=pl.BlockSpec((tb, dim_v), lambda i: (i, 0)),
        ),
        compiler_params=pltpu.CompilerParams(
            dimension_semantics=("parallel",)),                     # 2 TCs on v7x
    )(x_c, w_c, perm)


def _reference(x, wq, wk, wv, num_heads):
    """Pure-JAX reference mirroring the PyTorch forward exactly."""
    batch, dim_in = x.shape
    dim_k, dim_v = wq.shape[0], wv.shape[0]
    nh = num_heads
    dk, dv = dim_k // nh, dim_v // nh
    norm_fact = 1.0 / math.sqrt(dk)

    q = (x @ wq.T).reshape(batch, nh, dk)
    k = (x @ wk.T).reshape(batch, nh, dk)
    v = (x @ wv.T).reshape(batch, nh, dv)
    dist = jnp.einsum("bhd,bgd->bhg", q, k) * norm_fact
    dist = jax.nn.softmax(dist, axis=-1)
    att = jnp.einsum("bhg,bgd->bhd", dist, v)
    return att.transpose(0, 2, 1).reshape(batch, dim_v)


if __name__ == "__main__":
    # Small deterministic configuration consistent with the module.
    batch, dim_in, dim_k, dim_v, num_heads = 8, 32, 32, 32, 2

    key = jax.random.PRNGKey(0)
    kx, kq, kk, kv, kx2 = jax.random.split(key, 5)

    x = jax.random.normal(kx, (batch, dim_in), dtype=jnp.float32)
    # nn.Linear(dim_in, dim_out, bias=False) weights: shape (out_features, in_features)
    scale = 1.0 / math.sqrt(dim_in)
    wq = jax.random.uniform(kq, (dim_k, dim_in), jnp.float32, -scale, scale)
    wk = jax.random.uniform(kk, (dim_k, dim_in), jnp.float32, -scale, scale)
    wv = jax.random.uniform(kv, (dim_v, dim_in), jnp.float32, -scale, scale)

    ref = _reference(x, wq, wk, wv, num_heads)

    # f32 projection path (v5e-friendly), tight tolerance.
    out_f32 = jax.block_until_ready(
        multi_head_self_attention(x, wq, wk, wv, num_heads, compute_dtype=jnp.float32))
    assert out_f32.shape == (batch, dim_v)
    assert jnp.allclose(out_f32, ref, atol=1e-4, rtol=1e-4), "f32 kernel mismatch vs reference"

    # bf16 projection path (v6e/v7x MXU), f32 accumulation -> looser tolerance.
    out_bf16 = jax.block_until_ready(
        multi_head_self_attention(x, wq, wk, wv, num_heads, compute_dtype=jnp.bfloat16))
    assert jnp.allclose(out_bf16, ref, atol=5e-2, rtol=5e-2), "bf16 kernel mismatch vs reference"

    # Exercise the tiled/grid path (multiple batch blocks, tile rounded to sublane multiple).
    x2 = jax.random.normal(kx2, (64, dim_in), dtype=jnp.float32)
    ref2 = _reference(x2, wq, wk, wv, num_heads)
    out2 = jax.block_until_ready(
        multi_head_self_attention(x2, wq, wk, wv, num_heads,
                                  compute_dtype=jnp.float32, block_batch=16))
    assert jnp.allclose(out2, ref2, atol=1e-4, rtol=1e-4), "tiled kernel mismatch vs reference"

    print("KERNEL_OK")
</pallas_src>

<mosaic_0001>
module attributes {stable_mosaic.version = 11 : i64} {
  func.func @kernel(%arg0: i32, %arg1: memref<8x32xf32, #tpu.memory_space<vmem>>, %arg2: memref<32x96xf32, #tpu.memory_space<vmem>>, %arg3: memref<32x32xf32, #tpu.memory_space<vmem>>, %arg4: memref<8x32xf32, #tpu.memory_space<vmem>>) attributes {dimension_semantics = [#tpu.dimension_semantics<parallel>], iteration_bounds = array<i64: 1>, scalar_prefetch = 0 : i64, scratch_operands = 0 : i64, tpu.core_type = #tpu.core_type<tc>, window_params = [{transform_indices = @transform_0, window_bounds = array<i64: 8, 32>}, {pipeline_mode = #tpu.pipeline_mode<synchronous>, transform_indices = @transform_1, window_bounds = array<i64: 32, 96>}, {pipeline_mode = #tpu.pipeline_mode<synchronous>, transform_indices = @transform_2, window_bounds = array<i64: 32, 32>}, {transform_indices = @transform_3, window_bounds = array<i64: 8, 32>}]} {
    %c0 = arith.constant 0 : index
    %c0_0 = arith.constant 0 : index
    %0 = vector.load %arg1[%c0, %c0_0] : memref<8x32xf32, #tpu.memory_space<vmem>>, vector<8x32xf32>
    %c0_1 = arith.constant 0 : index
    %c0_2 = arith.constant 0 : index
    %1 = vector.load %arg2[%c0_1, %c0_2] : memref<32x96xf32, #tpu.memory_space<vmem>>, vector<32x96xf32>
    %cst = arith.constant dense<0.000000e+00> : vector<8x96xf32>
    %2 = tpu.matmul %0, %1, %cst {dimension_numbers = #tpu.dot_dimension_numbers<[1], [0], [0], [1], [0, 0, 1, 1], [], []>} : vector<8x32xf32>, vector<32x96xf32>, vector<8x96xf32> -> vector<8x96xf32>
    %3 = vector.extract_strided_slice %2 {offsets = [0, 0], sizes = [8, 16], strides = [1, 1]} : vector<8x96xf32> to vector<8x16xf32>
    %4 = vector.extract_strided_slice %2 {offsets = [0, 32], sizes = [8, 16], strides = [1, 1]} : vector<8x96xf32> to vector<8x16xf32>
    %5 = arith.mulf %3, %4 : vector<8x16xf32>
    %cst_3 = arith.constant dense<0.000000e+00> : vector<8xf32>
    %6 = vector.multi_reduction <add>, %5, %cst_3 [1] : vector<8x16xf32> to vector<8xf32>
    %7 = vector.shape_cast %6 : vector<8xf32> to vector<8x1xf32>
    %8 = vector.extract_strided_slice %2 {offsets = [0, 48], sizes = [8, 16], strides = [1, 1]} : vector<8x96xf32> to vector<8x16xf32>
    %9 = arith.mulf %3, %8 : vector<8x16xf32>
    %cst_4 = arith.constant dense<0.000000e+00> : vector<8xf32>
    %10 = vector.multi_reduction <add>, %9, %cst_4 [1] : vector<8x16xf32> to vector<8xf32>
    %11 = vector.shape_cast %10 : vector<8xf32> to vector<8x1xf32>
    %12 = tpu.concatenate %7, %11 in 1 : vector<8x1xf32>, vector<8x1xf32> -> vector<8x2xf32>
    %cst_5 = arith.constant dense<0xFF800000> : vector<8xf32>
    %13 = vector.multi_reduction <maximumf>, %12, %cst_5 [1] : vector<8x2xf32> to vector<8xf32>
    %14 = vector.shape_cast %13 : vector<8xf32> to vector<8x1xf32>
    %15 = vector.broadcast %14 : vector<8x1xf32> to vector<8x2xf32>
    %16 = arith.subf %12, %15 : vector<8x2xf32>
    %17 = math.exp %16 : vector<8x2xf32>
    %cst_6 = arith.constant dense<0.000000e+00> : vector<8xf32>
    %18 = vector.multi_reduction <add>, %17, %cst_6 [1] : vector<8x2xf32> to vector<8xf32>
    %19 = vector.shape_cast %18 : vector<8xf32> to vector<8x1xf32>
    %20 = tpu.reciprocal %19 {approx = true} : vector<8x1xf32> -> vector<8x1xf32>
    %21 = arith.mulf %19, %20 : vector<8x1xf32>
    %cst_7 = arith.constant 2.000000e+00 : f32
    %22 = vector.broadcast %cst_7 : f32 to vector<8x1xf32>
    %23 = arith.subf %22, %21 : vector<8x1xf32>
    %24 = arith.mulf %20, %23 : vector<8x1xf32>
    %25 = vector.broadcast %24 : vector<8x1xf32> to vector<8x2xf32>
    %26 = arith.mulf %17, %25 : vector<8x2xf32>
    %27 = vector.extract_strided_slice %26 {offsets = [0, 0], sizes = [8, 1], strides = [1, 1]} : vector<8x2xf32> to vector<8x1xf32>
    %28 = vector.extract_strided_slice %2 {offsets = [0, 64], sizes = [8, 16], strides = [1, 1]} : vector<8x96xf32> to vector<8x16xf32>
    %29 = vector.broadcast %27 : vector<8x1xf32> to vector<8x16xf32>
    %30 = arith.mulf %29, %28 : vector<8x16xf32>
    %31 = vector.extract_strided_slice %26 {offsets = [0, 1], sizes = [8, 1], strides = [1, 1]} : vector<8x2xf32> to vector<8x1xf32>
    %32 = vector.extract_strided_slice %2 {offsets = [0, 80], sizes = [8, 16], strides = [1, 1]} : vector<8x96xf32> to vector<8x16xf32>
    %33 = vector.broadcast %31 : vector<8x1xf32> to vector<8x16xf32>
    %34 = arith.mulf %33, %32 : vector<8x16xf32>
    %35 = arith.addf %30, %34 : vector<8x16xf32>
    %36 = vector.extract_strided_slice %2 {offsets = [0, 16], sizes = [8, 16], strides = [1, 1]} : vector<8x96xf32> to vector<8x16xf32>
    %37 = vector.extract_strided_slice %2 {offsets = [0, 32], sizes = [8, 16], strides = [1, 1]} : vector<8x96xf32> to vector<8x16xf32>
    %38 = arith.mulf %36, %37 : vector<8x16xf32>
    %cst_8 = arith.constant dense<0.000000e+00> : vector<8xf32>
    %39 = vector.multi_reduction <add>, %38, %cst_8 [1] : vector<8x16xf32> to vector<8xf32>
    %40 = vector.shape_cast %39 : vector<8xf32> to vector<8x1xf32>
    %41 = vector.extract_strided_slice %2 {offsets = [0, 48], sizes = [8, 16], strides = [1, 1]} : vector<8x96xf32> to vector<8x16xf32>
    %42 = arith.mulf %36, %41 : vector<8x16xf32>
    %cst_9 = arith.constant dense<0.000000e+00> : vector<8xf32>
    %43 = vector.multi_reduction <add>, %42, %cst_9 [1] : vector<8x16xf32> to vector<8xf32>
    %44 = vector.shape_cast %43 : vector<8xf32> to vector<8x1xf32>
    %45 = tpu.concatenate %40, %44 in 1 : vector<8x1xf32>, vector<8x1xf32> -> vector<8x2xf32>
    %cst_10 = arith.constant dense<0xFF800000> : vector<8xf32>
    %46 = vector.multi_reduction <maximumf>, %45, %cst_10 [1] : vector<8x2xf32> to vector<8xf32>
    %47 = vector.shape_cast %46 : vector<8xf32> to vector<8x1xf32>
    %48 = vector.broadcast %47 : vector<8x1xf32> to vector<8x2xf32>
    %49 = arith.subf %45, %48 : vector<8x2xf32>
    %50 = math.exp %49 : vector<8x2xf32>
    %cst_11 = arith.constant dense<0.000000e+00> : vector<8xf32>
    %51 = vector.multi_reduction <add>, %50, %cst_11 [1] : vector<8x2xf32> to vector<8xf32>
    %52 = vector.shape_cast %51 : vector<8xf32> to vector<8x1xf32>
    %53 = tpu.reciprocal %52 {approx = true} : vector<8x1xf32> -> vector<8x1xf32>
    %54 = arith.mulf %52, %53 : vector<8x1xf32>
    %cst_12 = arith.constant 2.000000e+00 : f32
    %55 = vector.broadcast %cst_12 : f32 to vector<8x1xf32>
    %56 = arith.subf %55, %54 : vector<8x1xf32>
    %57 = arith.mulf %53, %56 : vector<8x1xf32>
    %58 = vector.broadcast %57 : vector<8x1xf32> to vector<8x2xf32>
    %59 = arith.mulf %50, %58 : vector<8x2xf32>
    %60 = vector.extract_strided_slice %59 {offsets = [0, 0], sizes = [8, 1], strides = [1, 1]} : vector<8x2xf32> to vector<8x1xf32>
    %61 = vector.extract_strided_slice %2 {offsets = [0, 64], sizes = [8, 16], strides = [1, 1]} : vector<8x96xf32> to vector<8x16xf32>
    %62 = vector.broadcast %60 : vector<8x1xf32> to vector<8x16xf32>
    %63 = arith.mulf %62, %61 : vector<8x16xf32>
    %64 = vector.extract_strided_slice %59 {offsets = [0, 1], sizes = [8, 1], strides = [1, 1]} : vector<8x2xf32> to vector<8x1xf32>
    %65 = vector.extract_strided_slice %2 {offsets = [0, 80], sizes = [8, 16], strides = [1, 1]} : vector<8x96xf32> to vector<8x16xf32>
    %66 = vector.broadcast %64 : vector<8x1xf32> to vector<8x16xf32>
    %67 = arith.mulf %66, %65 : vector<8x16xf32>
    %68 = arith.addf %63, %67 : vector<8x16xf32>
    %69 = tpu.concatenate %35, %68 in 1 : vector<8x16xf32>, vector<8x16xf32> -> vector<8x32xf32>
    %c0_13 = arith.constant 0 : index
    %c0_14 = arith.constant 0 : index
    %70 = vector.load %arg3[%c0_13, %c0_14] : memref<32x32xf32, #tpu.memory_space<vmem>>, vector<32x32xf32>
    %cst_15 = arith.constant dense<0.000000e+00> : vector<8x32xf32>
    %71 = tpu.matmul %69, %70, %cst_15 {dimension_numbers = #tpu.dot_dimension_numbers<[1], [0], [0], [1], [0, 0, 1, 1], [], []>} : vector<8x32xf32>, vector<32x32xf32>, vector<8x32xf32> -> vector<8x32xf32>
    %c0_16 = arith.constant 0 : index
    %c0_17 = arith.constant 0 : index
    %72 = vector.load %arg4[%c0_16, %c0_17] : memref<8x32xf32, #tpu.memory_space<vmem>>, vector<8x32xf32>
    tpu.vector_store %arg4[%c0_16, %c0_17], %71 {strides = array<i32>} : memref<8x32xf32, #tpu.memory_space<vmem>>, vector<8x32xf32>,
    return
  }
  func.func @transform_0(%arg0: i32) -> (i32, i32) {
    %c0_i32 = arith.constant 0 : i32
    %c0_i32_0 = arith.constant 0 : i32
    return %arg0, %c0_i32 : i32, i32
  }
  func.func @transform_1(%arg0: i32) -> (i32, i32) {
    %c0_i32 = arith.constant 0 : i32
    %c0_i32_0 = arith.constant 0 : i32
    %c0_i32_1 = arith.constant 0 : i32
    return %c0_i32, %c0_i32_0 : i32, i32
  }
  func.func @transform_2(%arg0: i32) -> (i32, i32) {
    %c0_i32 = arith.constant 0 : i32
    %c0_i32_0 = arith.constant 0 : i32
    %c0_i32_1 = arith.constant 0 : i32
    return %c0_i32, %c0_i32_0 : i32, i32
  }
  func.func @transform_3(%arg0: i32) -> (i32, i32) {
    %c0_i32 = arith.constant 0 : i32
    %c0_i32_0 = arith.constant 0 : i32
    return %arg0, %c0_i32 : i32, i32
  }
}

</mosaic_0001>

<bundles_post_ra>
// kernel: tpu_custom_call.1
= control target key start
LH: loop header
LB: loop body
LE: loop exit
PB: predicated region body
PF: predicated region fallthrough
CT: control target
= control target key end

     0   :  { %8 = vsyncpa [#allocation3], 0  ;;  %s566_s0 = inlined_call_operand.hbm [shape: f32[8,32], index: 0, kind: input, shape index: {}]   ;;  %s567_s1 = inlined_call_operand.hbm [shape: f32[32,96], index: 1, kind: input, shape index: {}]   ;;  %s568_s2 = inlined_call_operand.hbm [shape: f32[32,32], index: 2, kind: input, shape index: {}]   ;;  %s569_s3 = inlined_call_operand.hbm [shape: f32[8,32], index: 3, kind: output, shape index: {}]  }
   0x1   :  { %9 = vsyncpa [#allocation6], 0 }
   0x2   :  { %10 = vsyncpa [#allocation4], 0  ;;  %s479_s12 = smov [#allocation5]  }
   0x3   :  { %s26_s13 = sshll.u32 %s479_s12, 4  ;;  %s27_s13 = int_to_ptr.vmem [resolvable:$true] %s26_s13 }
   0x4   :  { %s401_s14 = scalar_lea.vmem %s27_s13, 512  ;;  %p406_p1 = scmp.lt.s32.totalorder %s27_s13, %s27_s13 }
   0x5   :  { %p402_p0 = scmp.ne.s32.totalorder %s27_s13, %s401_s14  ;;  %p407_p2 = scmp.lt.s32.totalorder %s401_s14, %s401_s14 }
   0x7   :  { %p408_p3 = por %p407_p2, %p406_p1 }
   0x9   :  { %p409_p4 = pnand %p408_p3, %p402_p0 }
   0xb   :  { %412 = shalt.err (!%p409_p4)
}
   0xc   :  { %s480_s15 = smov 128   ;;  %s481_s16 = smov 8  }
   0xd   :  { %32 = dma.hbm_to_vmem [thread:$0]  %s567_s1, 512, %s27_s13, [#allocation6], %s480_s15, %s480_s15, %s481_s16  }
   0xe   :  { %s482_s19 = smov [#allocation2]   ;;  %s483_s21 = smov [#allocation7]  }
   0xf   :  { %s17_s20 = sshll.u32 %s482_s19, 4  ;;  %s38_s22 = sshll.u32 %s483_s21, 4  ;;  %s18_s20 = int_to_ptr.vmem [resolvable:$true] %s17_s20  ;;  %s39_s22 = int_to_ptr.vmem [resolvable:$true] %s38_s22 }
  0x10   :  { %s421_s23 = scalar_lea.vmem %s18_s20, 128  ;;  %p426_p6 = scmp.lt.s32.totalorder %s18_s20, %s18_s20 }
  0x11   :  { %p422_p5 = scmp.ne.s32.totalorder %s18_s20, %s421_s23  ;;  %p427_p7 = scmp.lt.s32.totalorder %s421_s23, %s421_s23 }
  0x13   :  { %p428_p8 = por %p427_p7, %p426_p6 }
  0x15   :  { %p429_p9 = pnand %p428_p8, %p422_p5 }
  0x17   :  { %432 = shalt.err (!%p429_p9)
}
  0x18   :  { %20 = dma.hbm_to_vmem [thread:$0]  %s566_s0, 128, %s18_s20, [#allocation3]  }
  0x19   :  { %s441_s26 = scalar_lea.vmem %s39_s22, 512  ;;  %p446_p11 = scmp.lt.s32.totalorder %s39_s22, %s39_s22 }
  0x1a   :  { %p442_p10 = scmp.ne.s32.totalorder %s39_s22, %s441_s26  ;;  %p447_p12 = scmp.lt.s32.totalorder %s441_s26, %s441_s26 }
  0x1c   :  { %p448_p13 = por %p447_p12, %p446_p11 }
  0x1e   :  { %p449_p0 = pnand %p448_p13, %p442_p10 }
  0x20   :  { %452 = shalt.err (!%p449_p0)
}
  0x21   :  { %44 = dma.hbm_to_vmem [thread:$0]  %s568_s2, 512, %s39_s22, [#allocation6], %s480_s15, %s480_s15, %s481_s16  }
  0x22   :  { %473 = dma.done.wait [#allocation3], 128  }
  0x23   :  { %474 = vsyncadd [#allocation3], 4294967168 }
  0x24   :  { %475 = dma.done.wait [#allocation6], 1024  }
  0x25   :  { %476 = vsyncadd [#allocation6], 4294966272  ;;  %v484_v0 = vmov 0.0   ;;  %vm485_vm0 = vmmov 0   ;;  %v58_v1 = vld [vmem:[#allocation5 + $0x18] sm:$0xff]  ;;  %v57_v2 = vld [vmem:[#allocation5 + $0x10] sm:$0xff] }
  0x26   :  { %346 = vmatprep.subr.mxu0 %v484_v0  ;;  %354 = vmatprep.mubr.msk.f32.mxu0 %vm485_vm0, %v484_v0  ;;  %v56_v3 = vld [vmem:[#allocation5 + $0x8] sm:$0xff]  ;;  %v55_v4 = vld [vmem:[#allocation5] sm:$0xff]  ;;  %v54_v5 = vld [vmem:[#allocation2] sm:$0xff]  ;;  %vm59_vm1 = vcmask 261120   ;;  %s486_s0 = smov 80   ;;  %s487_s2 = smov 96  }
  0x27   :  { %357 = vmatprep.subr.mxu1 %v484_v0  ;;  %365 = vmatprep.mubr.msk.f32.mxu1 %vm485_vm0, %v484_v0  ;;  %s488_s28 = smov 112   ;;  %vm138_vm2 = vcmask 130048   ;;  %vm149_vm3 = vcmask 7168   ;;  %vm151_vm4 = vcmask 15360   ;;  %v489_v33 = vmov 1   ;;  %v243_v56 = vld [vmem:[#allocation7 + $0x18] sm:$0xff] }
  0x28   :  { %347 = vmatpush3.msra.mxu0 %v58_v1  ;;  %382 = vset.pattern.permute.xlu0 %v489_v33  ;;  %v490_v51 = vmov 0   ;;  %v242_v57 = vld [vmem:[#allocation7 + $0x10] sm:$0xff]  ;;  %v241_v59 = vld [vmem:[#allocation7 + $0x8] sm:$0xff]  ;;  %s491_s29 = smov 64   ;;  %v240_v1 = vld [vmem:[#allocation7] sm:$0xff]  ;;  %s492_s30 = smov [#allocation8]  }
  0x29   :  { %348 = vmatprep.subr.mxu0 %v484_v0  ;;  %383 = vset.pattern.permute.xlu1 %v489_v33  ;;  %s324_s4 = sshll.u32 %s492_s30, 4  ;;  %s325_s4 = int_to_ptr.vmem [resolvable:$true] %s324_s4 }
  0x2a   :  { %349 = vmatpush3.msra.mxu0 %v57_v2  ;;  %358 = vmatpush3.msra.mxu1 %v243_v56  ;;  %s453_s5 = scalar_lea.vmem %s325_s4, 128  ;;  %p458_p2 = scmp.lt.s32.totalorder %s325_s4, %s325_s4 }
  0x2b   :  { %350 = vmatprep.subr.mxu0 %v484_v0  ;;  %359 = vmatprep.subr.mxu1 %v484_v0  ;;  %p454_p1 = scmp.ne.s32.totalorder %s325_s4, %s453_s5  ;;  %p459_p3 = scmp.lt.s32.totalorder %s453_s5, %s453_s5 }
  0x2c   :  { %351 = vmatpush3.msra.mxu0 %v56_v3  ;;  %360 = vmatpush3.msra.mxu1 %v242_v57 }
  0x2d   :  { %352 = vmatprep.subr.mxu0 %v484_v0  ;;  %361 = vmatprep.subr.mxu1 %v484_v0  ;;  %p460_p4 = por %p459_p3, %p458_p2 }
  0x2e   :  { %353 = vmatpush3.msra.mxu0 %v55_v4  ;;  %362 = vmatpush3.msra.mxu1 %v241_v59 }
  0x2f   :  { %355 = vmatmul.mubr.msk.f32.vlgmr.msra.gmra.mxu0 %vm59_vm1, %v54_v5  ;;  %363 = vmatprep.subr.mxu1 %v484_v0  ;;  %p461_p5 = pnand %p460_p4, %p454_p1 }
  0x30   :  { %364 = vmatpush3.msra.mxu1 %v240_v1 }
  0xef   :  { %v530_v6 = vpop.f32.mrf.mxu0 }
  0xf0   :  { %142 = vrot.lane.b32.xlu1 %v530_v6, %s486_s0  ;;  %134 = vrot.lane.b32.xlu0 %v530_v6, %s487_s2 }
  0xf1   :  { %v356_v7 = vpop.f32.mrf.mxu0 }
  0xf4   :  { %182 = vrot.lane.b32.xlu0 %v530_v6, %s488_s28 }
 0x162   :  { %v135_v8 = vpop.permute.xlu0 %134  ;;  %v143_v12 = vpop.permute.xlu1 %142 }
 0x163   :  { %v137_v9 = vmul.f32 %v135_v8, %v530_v6  ;;  %v145_v13 = vmul.f32 %v143_v12, %v530_v6 }
 0x165   :  { %194 = vrot.lane.b32.xlu0 %v137_v9, %s488_s28  ;;  %v146_v14 = vsel %vm138_vm2, %v145_v13, 0.0  ;;  %v139_v15 = vsel %vm138_vm2, %v137_v9, 0.0 }
 0x166   :  { %v183_v10 = vpop.permute.xlu0 %182 }
 0x167   :  { %v185_v11 = vmul.f32 %v183_v10, %v530_v6 }
 0x169   :  { %187 = vrot.lane.b32.xlu1 %v185_v11, %s488_s28 }
 0x184   :  { %147 = vadd.xlane.f32.xlu0 %v146_v14 }
 0x18d   :  { %140 = vadd.xlane.f32.xlu1 %v139_v15 }
 0x1d7   :  { %v195_v16 = vpop.permute.xlu0 %194 }
 0x1d8   :  { %v197_v17 = vsel %vm138_vm2, %v195_v16, 0.0 }
 0x1d9   :  { %198 = vadd.xlane.f32.xlu1 %v197_v17 }
 0x1db   :  { %v188_v18 = vpop.permute.xlu1 %187 }
 0x1dc   :  { %v190_v19 = vsel %vm138_vm2, %v188_v18, 0.0 }
 0x1dd   :  { %191 = vadd.xlane.f32.xlu0 %v190_v19 }
 0x20d   :  { %v148_v20 = vpop.xlane.xlu0 %147 }
 0x216   :  { %v141_v21 = vpop.xlane.xlu1 %140 }
 0x217   :  { %v150_v22 = vsel %vm149_vm3, %v141_v21, %v148_v20 }
 0x218   :  { %v152_v23 = vsel %vm151_vm4, %v150_v22, -inf }
 0x219   :  { %153 = vmax.xlane.f32.xlu0 %v152_v23 }
 0x262   :  { %v199_v24 = vpop.xlane.xlu1 %198 }
 0x266   :  { %v192_v25 = vpop.xlane.xlu0 %191 }
 0x267   :  { %v200_v26 = vsel %vm149_vm3, %v192_v25, %v199_v24 }
 0x268   :  { %v201_v27 = vsel %vm151_vm4, %v200_v26, -inf }
 0x269   :  { %202 = vmax.xlane.f32.xlu1 %v201_v27 }
 0x2a2   :  { %v154_v28 = vpop.xlane.xlu0 %153 }
 0x2a3   :  { %v155_v29 = vsub.f32 %v150_v22, %v154_v28 }
 0x2a5   :  { %v156_v30 = vmul.f32 1.442695, %v155_v29 }
 0x2a7   :  { %385 = vpow2.f32 %v156_v30 }
 0x2b4   :  { %v386_v31 = vpop.eup %385 }
 0x2b5   :  { %v158_v32 = vsel %vm151_vm4, %v386_v31, 0.0 }
 0x2b6   :  { %159 = vadd.xlane.f32.xlu0 %v158_v32 }
 0x2f2   :  { %v203_v34 = vpop.xlane.xlu1 %202 }
 0x2f3   :  { %v204_v35 = vsub.f32 %v200_v26, %v203_v34 }
 0x2f5   :  { %v205_v36 = vmul.f32 1.442695, %v204_v35 }
 0x2f7   :  { %387 = vpow2.f32 %v205_v36 }
 0x304   :  { %v388_v37 = vpop.eup %387 }
 0x305   :  { %v207_v38 = vsel %vm151_vm4, %v388_v37, 0.0 }
 0x306   :  { %208 = vadd.xlane.f32.xlu1 %v207_v38 }
 0x33f   :  { %v160_v39 = vpop.xlane.xlu0 %159 }
 0x340   :  { %389 = vrcp.f32 %v160_v39 }
 0x34d   :  { %v390_v40 = vpop.eup %389 }
 0x34e   :  { %v162_v41 = vmul.f32 %v390_v40, %v160_v39 }
 0x350   :  { %v163_v42 = vsub.f32 2.0, %v162_v41 }
 0x352   :  { %v164_v43 = vmul.f32 %v390_v40, %v163_v42 }
 0x354   :  { %v165_v44 = vmul.f32 %v386_v31, %v164_v43 }
 0x356   :  { %173 = vperm.xlu0 %382, %v165_v44  }
 0x38f   :  { %v209_v45 = vpop.xlane.xlu1 %208 }
 0x390   :  { %391 = vrcp.f32 %v209_v45 }
 0x39d   :  { %v392_v46 = vpop.eup %391 }
 0x39e   :  { %v211_v47 = vmul.f32 %v392_v46, %v209_v45 }
 0x3a0   :  { %v212_v48 = vsub.f32 2.0, %v211_v47 }
 0x3a2   :  { %v213_v49 = vmul.f32 %v392_v46, %v212_v48 }
 0x3a4   :  { %v214_v50 = vmul.f32 %v388_v37, %v213_v49 }
 0x3a6   :  { %222 = vperm.xlu1 %383, %v214_v50  }
 0x3aa   :  { %384 = vset.pattern.permute.xlu1 %v490_v51 }
 0x3ab   :  { %168 = vperm.xlu1 %384, %v165_v44  }
 0x3af   :  { %217 = vperm.xlu1 %384, %v214_v50  }
 0x3d1   :  { %v174_v52 = vpop.permute.xlu0 %173 }
 0x3d2   :  { %v176_v53 = vmul.f32 %v174_v52, %v530_v6 }
 0x3d4   :  { %178 = vrot.lane.b32.xlu1 %v176_v53, %s488_s28 }
 0x421   :  { %v223_v54 = vpop.permute.xlu1 %222 }
 0x422   :  { %v225_v55 = vmul.f32 %v223_v54, %v530_v6 }
 0x424   :  { %227 = vrot.lane.b32.xlu1 %v225_v55, %s488_s28 }
 0x426   :  { %v169_v58 = vpop.permute.xlu1 %168 }
 0x427   :  { %v171_v61 = vmul.f32 %v169_v58, %v530_v6 }
 0x42a   :  { %v218_v60 = vpop.permute.xlu1 %217 }
 0x42b   :  { %v220_v2 = vmul.f32 %v218_v60, %v530_v6 }
 0x446   :  { %v179_v62 = vpop.permute.xlu1 %178 }
 0x447   :  { %v181_v63 = vadd.f32 %v179_v62, %v171_v61 }
 0x449   :  { %232 = vrot.lane.b32.xlu1 %v181_v63, %s491_s29 }
 0x496   :  { %v228_v3 = vpop.permute.xlu1 %227 }
 0x497   :  { %v230_v4 = vadd.f32 %v228_v3, %v220_v2 }
 0x499   :  { %236 = vrot.lane.b32.xlu1 %v230_v4, %s486_s0 }
 0x4bb   :  { %v233_v5 = vpop.permute.xlu1 %232 }
 0x50b   :  { %v237_v7 = vpop.permute.xlu1 %236 }
 0x50c   :  { %v239_v8 = vsel %vm138_vm2, %v233_v5, %v237_v7 }
 0x50d   :  { %366 = vmatmul.mubr.msk.f32.vlgmr.msra.gmra.mxu1 %vm59_vm1, %v239_v8 }
 0x5cd   :  { %v313_v0 = vpop.f32.mrf.mxu1 }
 0x5ce   :  { %317 = vst.msk [vmem:[#allocation8] sm:$0xff] %vm59_vm1, %v313_v0 }
 0x5cf   :  { %v367_v9 = vpop.f32.mrf.mxu1 }
 0x5d0   :  { %464 = shalt.err (!%p461_p5)
}
 0x5d1   :  { %327 = dma.vmem_to_hbm [thread:$0]  %s325_s4, 128, %s569_s3, [#allocation4]  }
 0x5d2   :  { %477 = dma.done.wait [#allocation4], 128  }
 0x5d3   :  { %478 = vsyncadd [#allocation4], 4294967168 }
 0x5d4   :  { %331 = vsyncpa [#allocation3], 1 }
 0x5d5   :  { %332 = vsyncpa [#allocation6], 1 }
 0x5d6   :  { %333 = vsyncpa [#allocation4], 1 }

</bundles_post_ra>
